<compile_context>
chip_gen: v7x
topology: tpu7x:2x2x1
jax: 0.10.0
libtpu: 0.0.40
codegen_flags: <defaults>
</compile_context>

<pallas_src>
import jax
import jax.numpy as jnp
from jax.experimental import pallas as pl
from jax.experimental.pallas import tpu as pltpu


def _round_up(x, m):
    return (x + m - 1) // m * m


def residual_block_kernel(x_ref, w1_ref, b1_ref, w2_ref, b2_ref, o_ref):
    # x_ref : (tb, Dp)  f32 or bf16 (I/O dtype)
    # w1_ref: (Dp, Hp)  bf16   pre-transposed to (in, out)  -> plain x @ W1
    # b1_ref: (1, Hp)   f32
    # w2_ref: (Hp, Dp)  bf16   pre-transposed to (in, out)
    # b2_ref: (1, Dp)   f32
    x = x_ref[...]
    h = jnp.dot(x.astype(jnp.bfloat16), w1_ref[...],
                preferred_element_type=jnp.float32)
    h = jnp.maximum(h + b1_ref[...], 0.0)                 # ReLU, f32
    y = jnp.dot(h.astype(jnp.bfloat16), w2_ref[...],
                preferred_element_type=jnp.float32)
    y = jnp.maximum(y + b2_ref[...], 0.0)                 # ReLU, f32
    o_ref[...] = (x.astype(jnp.float32) + y).astype(o_ref.dtype)  # residual add in f32


def prepare_residual_block_params(w1, b1, w2, b2, *, lane_align=128):
    """One-time parameter prep (do at load time, NOT in the hot path).

    PyTorch nn.Linear layout in: w1 (H, D), b1 (H,), w2 (D, H), b2 (D,).
    Pads feature dims to `lane_align` (128; use 256 on v6e/v7x when D/H are
    large, for full 2x256^2 MXU utilization), transposes weights to (in, out)
    and casts them to bf16. Zero padding is mathematically inert.
    """
    H, D = w1.shape
    Dp = _round_up(D, lane_align)
    Hp = _round_up(H, lane_align)
    w1_t = jnp.pad(w1, ((0, Hp - H), (0, Dp - D))).T.astype(jnp.bfloat16)   # (Dp, Hp)
    w2_t = jnp.pad(w2, ((0, Dp - D), (0, Hp - H))).T.astype(jnp.bfloat16)   # (Hp, Dp)
    b1_p = jnp.pad(b1, ((0, Hp - H),)).reshape(1, Hp).astype(jnp.float32)
    b2_p = jnp.pad(b2, ((0, Dp - D),)).reshape(1, Dp).astype(jnp.float32)
    return dict(w1=w1_t, b1=b1_p, w2=w2_t, b2=b2_p, D=D, H=H, Dp=Dp, Hp=Hp)


def residual_block(x, params, *, tb=256, io_dtype=None, vmem_limit_bytes=None):
    """x: (B, D) f32; params: output of prepare_residual_block_params."""
    w1_t, b1_p, w2_t, b2_p = params["w1"], params["b1"], params["w2"], params["b2"]
    D, Dp, Hp = params["D"], params["Dp"], params["Hp"]
    B = x.shape[0]
    out_dtype = io_dtype if io_dtype is not None else x.dtype

    # Pad x lanes only if D is not lane-aligned (keep D aligned upstream in a
    # real model to avoid this extra HBM pass); cast at the boundary for the
    # optional bf16 I/O path.
    x_p = x
    if Dp != D:
        x_p = jnp.pad(x_p, ((0, 0), (0, Dp - D)))
    if io_dtype is not None and x_p.dtype != io_dtype:
        x_p = x_p.astype(io_dtype)

    # Batch tiling: 256-row default; force >= 2 roughly-equal grid steps when B
    # allows so the "parallel" axis shards across v7x's two TensorCores and the
    # x/out DMAs overlap compute. Rebalanced so the last tile isn't nearly empty.
    n_steps = max(pl.cdiv(B, tb), 2 if B >= 16 else 1)
    tb_eff = min(_round_up(B, 8), _round_up(pl.cdiv(B, n_steps), 8))
    grid = (pl.cdiv(B, tb_eff),)

    io_bytes = jnp.dtype(x_p.dtype).itemsize
    resident_bytes = w1_t.size * 2 + w2_t.size * 2 + (Hp + Dp) * 4
    if vmem_limit_bytes is None:
        io_tile_bytes = 2 * 2 * tb_eff * Dp * io_bytes      # double-buffered x + out tiles
        interm_bytes = tb_eff * Hp * 6                       # f32 h + bf16 copy of h
        vmem_limit_bytes = min(
            max(resident_bytes + io_tile_bytes + interm_bytes + (4 << 20), 16 << 20),
            64 << 20)                                        # safe ceiling on v5e/v6e/v7x

    cost = pl.CostEstimate(
        flops=4 * B * Dp * Hp,                               # two (B,Dp)/(B,Hp) matmuls
        transcendentals=0,
        bytes_accessed=2 * B * Dp * io_bytes + resident_bytes)

    def build(single_buffer_resident):
        res_kw = {"pipeline_mode": pl.Buffered(1)} if single_buffer_resident else {}
        return pl.pallas_call(
            residual_block_kernel,
            out_shape=jax.ShapeDtypeStruct((B, Dp), out_dtype),
            grid=grid,
            in_specs=[
                pl.BlockSpec((tb_eff, Dp), lambda i: (i, 0)),           # x tile over batch
                pl.BlockSpec((Dp, Hp), lambda i: (0, 0), **res_kw),     # W1 (in,out), resident
                pl.BlockSpec((1, Hp), lambda i: (0, 0), **res_kw),      # b1
                pl.BlockSpec((Hp, Dp), lambda i: (0, 0), **res_kw),     # W2 (in,out), resident
                pl.BlockSpec((1, Dp), lambda i: (0, 0), **res_kw),      # b2
            ],
            out_specs=pl.BlockSpec((tb_eff, Dp), lambda i: (i, 0)),
            compiler_params=pltpu.CompilerParams(
                dimension_semantics=("parallel",),
                vmem_limit_bytes=vmem_limit_bytes),
            cost_estimate=cost,
        )

    try:
        out = build(True)(x_p, w1_t, b1_p, w2_t, b2_p)
    except Exception:
        # TODO(synk): drop this fallback once pl.Buffered(1) single-buffering of
        # grid-invariant operands is confirmed on all deployed jax versions.
        out = build(False)(x_p, w1_t, b1_p, w2_t, b2_p)

    if Dp != D:
        # Inert zero-padded lanes; avoid this pass by keeping D lane-aligned upstream.
        out = out[:, :D]
    return out


def residual_block_ref(x, w1, b1, w2, b2, matmul_dtype=jnp.float32):
    def mm(a, w):  # a @ w.T with (out,in)-layout w
        return jax.lax.dot_general(
            a.astype(matmul_dtype), w.astype(matmul_dtype),
            (((1,), (1,)), ((), ())), preferred_element_type=jnp.float32)
    h = jnp.maximum(mm(x, w1) + b1, 0.0)
    y = jnp.maximum(mm(h, w2) + b2, 0.0)
    return x + y


if __name__ == "__main__":
    B, data_dim, hidden_dim = 8, 32, 64

    key = jax.random.PRNGKey(0)
    kx, kw1, kb1, kw2, kb2 = jax.random.split(key, 5)

    x = jax.random.normal(kx, (B, data_dim), dtype=jnp.float32)
    # PyTorch nn.Linear shapes: weight is (out_features, in_features).
    w1 = jax.random.normal(kw1, (hidden_dim, data_dim), dtype=jnp.float32) * 0.1
    b1 = jax.random.normal(kb1, (hidden_dim,), dtype=jnp.float32) * 0.1
    w2 = jax.random.normal(kw2, (data_dim, hidden_dim), dtype=jnp.float32) * 0.1
    b2 = jax.random.normal(kb2, (data_dim,), dtype=jnp.float32) * 0.1

    # One-time parameter prep (pad / transpose / bf16 cast) outside the hot path.
    params = prepare_residual_block_params(w1, b1, w2, b2)

    out = residual_block(x, params)
    jax.block_until_ready(out)

    # Tight check vs a reference that mimics the kernel's bf16 matmul inputs.
    ref_bf16 = residual_block_ref(x, w1, b1, w2, b2, matmul_dtype=jnp.bfloat16)
    assert jnp.allclose(out, ref_bf16, atol=1e-3, rtol=1e-3), "mismatch vs bf16-matched reference"

    # Loose check vs the pure-f32 PyTorch-equivalent reference (bf16 matmul noise).
    ref_f32 = residual_block_ref(x, w1, b1, w2, b2, matmul_dtype=jnp.float32)
    assert jnp.allclose(out, ref_f32, atol=3e-2, rtol=3e-2), "mismatch vs f32 reference"

    # Optional bf16 I/O path (halves x/out HBM traffic in the mem-bound regime).
    out_bf16_io = residual_block(x, params, io_dtype=jnp.bfloat16)
    jax.block_until_ready(out_bf16_io)
    assert jnp.allclose(out_bf16_io.astype(jnp.float32), ref_f32, atol=1e-1, rtol=1e-1), \
        "mismatch on bf16-I/O path"

    print("KERNEL_OK")
</pallas_src>

<mosaic_0001>
module attributes {stable_mosaic.version = 11 : i64} {
  func.func @residual_block_kernel(%arg0: i32, %arg1: memref<8x128xf32, #tpu.memory_space<vmem>>, %arg2: memref<128x128xbf16, #tpu.memory_space<vmem>>, %arg3: memref<1x128xf32, #tpu.memory_space<vmem>>, %arg4: memref<128x128xbf16, #tpu.memory_space<vmem>>, %arg5: memref<1x128xf32, #tpu.memory_space<vmem>>, %arg6: memref<8x128xf32, #tpu.memory_space<vmem>>) attributes {dimension_semantics = [#tpu.dimension_semantics<parallel>], iteration_bounds = array<i64: 1>, scalar_prefetch = 0 : i64, scratch_operands = 0 : i64, tpu.core_type = #tpu.core_type<tc>, window_params = [{transform_indices = @transform_0, window_bounds = array<i64: 8, 128>}, {pipeline_mode = #tpu.pipeline_mode<synchronous>, transform_indices = @transform_1, window_bounds = array<i64: 128, 128>}, {pipeline_mode = #tpu.pipeline_mode<synchronous>, transform_indices = @transform_2, window_bounds = array<i64: 1, 128>}, {pipeline_mode = #tpu.pipeline_mode<synchronous>, transform_indices = @transform_3, window_bounds = array<i64: 128, 128>}, {pipeline_mode = #tpu.pipeline_mode<synchronous>, transform_indices = @transform_4, window_bounds = array<i64: 1, 128>}, {transform_indices = @transform_5, window_bounds = array<i64: 8, 128>}]} {
    %c0 = arith.constant 0 : index
    %c0_0 = arith.constant 0 : index
    %0 = vector.load %arg1[%c0, %c0_0] : memref<8x128xf32, #tpu.memory_space<vmem>>, vector<8x128xf32>
    %1 = arith.truncf %0 : vector<8x128xf32> to vector<8x128xbf16>
    %c0_1 = arith.constant 0 : index
    %c0_2 = arith.constant 0 : index
    %2 = vector.load %arg2[%c0_1, %c0_2] : memref<128x128xbf16, #tpu.memory_space<vmem>>, vector<128x128xbf16>
    %cst = arith.constant dense<0.000000e+00> : vector<8x128xf32>
    %3 = tpu.matmul %1, %2, %cst {dimension_numbers = #tpu.dot_dimension_numbers<[1], [0], [0], [1], [0, 0, 1, 1], [], []>} : vector<8x128xbf16>, vector<128x128xbf16>, vector<8x128xf32> -> vector<8x128xf32>
    %c0_3 = arith.constant 0 : index
    %c0_4 = arith.constant 0 : index
    %4 = vector.load %arg3[%c0_3, %c0_4] : memref<1x128xf32, #tpu.memory_space<vmem>>, vector<1x128xf32>
    %5 = vector.broadcast %4 : vector<1x128xf32> to vector<8x128xf32>
    %6 = arith.addf %3, %5 : vector<8x128xf32>
    %cst_5 = arith.constant 0.000000e+00 : f32
    %7 = vector.broadcast %cst_5 : f32 to vector<8x128xf32>
    %8 = arith.maximumf %6, %7 : vector<8x128xf32>
    %9 = arith.truncf %8 : vector<8x128xf32> to vector<8x128xbf16>
    %c0_6 = arith.constant 0 : index
    %c0_7 = arith.constant 0 : index
    %10 = vector.load %arg4[%c0_6, %c0_7] : memref<128x128xbf16, #tpu.memory_space<vmem>>, vector<128x128xbf16>
    %cst_8 = arith.constant dense<0.000000e+00> : vector<8x128xf32>
    %11 = tpu.matmul %9, %10, %cst_8 {dimension_numbers = #tpu.dot_dimension_numbers<[1], [0], [0], [1], [0, 0, 1, 1], [], []>} : vector<8x128xbf16>, vector<128x128xbf16>, vector<8x128xf32> -> vector<8x128xf32>
    %c0_9 = arith.constant 0 : index
    %c0_10 = arith.constant 0 : index
    %12 = vector.load %arg5[%c0_9, %c0_10] : memref<1x128xf32, #tpu.memory_space<vmem>>, vector<1x128xf32>
    %13 = vector.broadcast %12 : vector<1x128xf32> to vector<8x128xf32>
    %14 = arith.addf %11, %13 : vector<8x128xf32>
    %cst_11 = arith.constant 0.000000e+00 : f32
    %15 = vector.broadcast %cst_11 : f32 to vector<8x128xf32>
    %16 = arith.maximumf %14, %15 : vector<8x128xf32>
    %17 = arith.addf %0, %16 : vector<8x128xf32>
    %c0_12 = arith.constant 0 : index
    %c0_13 = arith.constant 0 : index
    %18 = vector.load %arg6[%c0_12, %c0_13] : memref<8x128xf32, #tpu.memory_space<vmem>>, vector<8x128xf32>
    tpu.vector_store %arg6[%c0_12, %c0_13], %17 {strides = array<i32>} : memref<8x128xf32, #tpu.memory_space<vmem>>, vector<8x128xf32>,
    return
  }
  func.func @transform_0(%arg0: i32) -> (i32, i32) {
    %c0_i32 = arith.constant 0 : i32
    %c0_i32_0 = arith.constant 0 : i32
    return %arg0, %c0_i32 : i32, i32
  }
  func.func @transform_1(%arg0: i32) -> (i32, i32) {
    %c0_i32 = arith.constant 0 : i32
    %c0_i32_0 = arith.constant 0 : i32
    %c0_i32_1 = arith.constant 0 : i32
    return %c0_i32, %c0_i32_0 : i32, i32
  }
  func.func @transform_2(%arg0: i32) -> (i32, i32) {
    %c0_i32 = arith.constant 0 : i32
    %c0_i32_0 = arith.constant 0 : i32
    %c0_i32_1 = arith.constant 0 : i32
    return %c0_i32, %c0_i32_0 : i32, i32
  }
  func.func @transform_3(%arg0: i32) -> (i32, i32) {
    %c0_i32 = arith.constant 0 : i32
    %c0_i32_0 = arith.constant 0 : i32
    %c0_i32_1 = arith.constant 0 : i32
    return %c0_i32, %c0_i32_0 : i32, i32
  }
  func.func @transform_4(%arg0: i32) -> (i32, i32) {
    %c0_i32 = arith.constant 0 : i32
    %c0_i32_0 = arith.constant 0 : i32
    %c0_i32_1 = arith.constant 0 : i32
    return %c0_i32, %c0_i32_0 : i32, i32
  }
  func.func @transform_5(%arg0: i32) -> (i32, i32) {
    %c0_i32 = arith.constant 0 : i32
    %c0_i32_0 = arith.constant 0 : i32
    return %arg0, %c0_i32 : i32, i32
  }
}

module attributes {stable_mosaic.version = 11 : i64} {
  func.func @residual_block_kernel(%arg0: i32, %arg1: memref<8x128xf32, #tpu.memory_space<vmem>>, %arg2: memref<128x128xbf16, #tpu.memory_space<vmem>>, %arg3: memref<1x128xf32, #tpu.memory_space<vmem>>, %arg4: memref<128x128xbf16, #tpu.memory_space<vmem>>, %arg5: memref<1x128xf32, #tpu.memory_space<vmem>>, %arg6: memref<8x128xf32, #tpu.memory_space<vmem>>) attributes {dimension_semantics = [#tpu.dimension_semantics<parallel>], iteration_bounds = array<i64: 1>, scalar_prefetch = 0 : i64, scratch_operands = 0 : i64, tpu.core_type = #tpu.core_type<tc>, window_params = [{transform_indices = @transform_0, window_bounds = array<i64: 8, 128>}, {pipeline_mode = #tpu.pipeline_mode<synchronous>, transform_indices = @transform_1, window_bounds = array<i64: 128, 128>}, {pipeline_mode = #tpu.pipeline_mode<synchronous>, transform_indices = @transform_2, window_bounds = array<i64: 1, 128>}, {pipeline_mode = #tpu.pipeline_mode<synchronous>, transform_indices = @transform_3, window_bounds = array<i64: 128, 128>}, {pipeline_mode = #tpu.pipeline_mode<synchronous>, transform_indices = @transform_4, window_bounds = array<i64: 1, 128>}, {transform_indices = @transform_5, window_bounds = array<i64: 8, 128>}]} {
    %c0 = arith.constant 0 : index
    %c0_0 = arith.constant 0 : index
    %0 = vector.load %arg1[%c0, %c0_0] : memref<8x128xf32, #tpu.memory_space<vmem>>, vector<8x128xf32>
    %1 = arith.truncf %0 : vector<8x128xf32> to vector<8x128xbf16>
    %c0_1 = arith.constant 0 : index
    %c0_2 = arith.constant 0 : index
    %2 = vector.load %arg2[%c0_1, %c0_2] : memref<128x128xbf16, #tpu.memory_space<vmem>>, vector<128x128xbf16>
    %cst = arith.constant dense<0.000000e+00> : vector<8x128xf32>
    %3 = tpu.matmul %1, %2, %cst {dimension_numbers = #tpu.dot_dimension_numbers<[1], [0], [0], [1], [0, 0, 1, 1], [], []>} : vector<8x128xbf16>, vector<128x128xbf16>, vector<8x128xf32> -> vector<8x128xf32>
    %c0_3 = arith.constant 0 : index
    %c0_4 = arith.constant 0 : index
    %4 = vector.load %arg3[%c0_3, %c0_4] : memref<1x128xf32, #tpu.memory_space<vmem>>, vector<1x128xf32>
    %5 = vector.broadcast %4 : vector<1x128xf32> to vector<8x128xf32>
    %6 = arith.addf %3, %5 : vector<8x128xf32>
    %cst_5 = arith.constant 0.000000e+00 : f32
    %7 = vector.broadcast %cst_5 : f32 to vector<8x128xf32>
    %8 = arith.maximumf %6, %7 : vector<8x128xf32>
    %9 = arith.truncf %8 : vector<8x128xf32> to vector<8x128xbf16>
    %c0_6 = arith.constant 0 : index
    %c0_7 = arith.constant 0 : index
    %10 = vector.load %arg4[%c0_6, %c0_7] : memref<128x128xbf16, #tpu.memory_space<vmem>>, vector<128x128xbf16>
    %cst_8 = arith.constant dense<0.000000e+00> : vector<8x128xf32>
    %11 = tpu.matmul %9, %10, %cst_8 {dimension_numbers = #tpu.dot_dimension_numbers<[1], [0], [0], [1], [0, 0, 1, 1], [], []>} : vector<8x128xbf16>, vector<128x128xbf16>, vector<8x128xf32> -> vector<8x128xf32>
    %c0_9 = arith.constant 0 : index
    %c0_10 = arith.constant 0 : index
    %12 = vector.load %arg5[%c0_9, %c0_10] : memref<1x128xf32, #tpu.memory_space<vmem>>, vector<1x128xf32>
    %13 = vector.broadcast %12 : vector<1x128xf32> to vector<8x128xf32>
    %14 = arith.addf %11, %13 : vector<8x128xf32>
    %cst_11 = arith.constant 0.000000e+00 : f32
    %15 = vector.broadcast %cst_11 : f32 to vector<8x128xf32>
    %16 = arith.maximumf %14, %15 : vector<8x128xf32>
    %17 = arith.addf %0, %16 : vector<8x128xf32>
    %c0_12 = arith.constant 0 : index
    %c0_13 = arith.constant 0 : index
    %18 = vector.load %arg6[%c0_12, %c0_13] : memref<8x128xf32, #tpu.memory_space<vmem>>, vector<8x128xf32>
    tpu.vector_store %arg6[%c0_12, %c0_13], %17 {strides = array<i32>} : memref<8x128xf32, #tpu.memory_space<vmem>>, vector<8x128xf32>,
    return
  }
  func.func @transform_0(%arg0: i32) -> (i32, i32) {
    %c0_i32 = arith.constant 0 : i32
    %c0_i32_0 = arith.constant 0 : i32
    return %arg0, %c0_i32 : i32, i32
  }
  func.func @transform_1(%arg0: i32) -> (i32, i32) {
    %c0_i32 = arith.constant 0 : i32
    %c0_i32_0 = arith.constant 0 : i32
    %c0_i32_1 = arith.constant 0 : i32
    return %c0_i32, %c0_i32_0 : i32, i32
  }
  func.func @transform_2(%arg0: i32) -> (i32, i32) {
    %c0_i32 = arith.constant 0 : i32
    %c0_i32_0 = arith.constant 0 : i32
    %c0_i32_1 = arith.constant 0 : i32
    return %c0_i32, %c0_i32_0 : i32, i32
  }
  func.func @transform_3(%arg0: i32) -> (i32, i32) {
    %c0_i32 = arith.constant 0 : i32
    %c0_i32_0 = arith.constant 0 : i32
    %c0_i32_1 = arith.constant 0 : i32
    return %c0_i32, %c0_i32_0 : i32, i32
  }
  func.func @transform_4(%arg0: i32) -> (i32, i32) {
    %c0_i32 = arith.constant 0 : i32
    %c0_i32_0 = arith.constant 0 : i32
    %c0_i32_1 = arith.constant 0 : i32
    return %c0_i32, %c0_i32_0 : i32, i32
  }
  func.func @transform_5(%arg0: i32) -> (i32, i32) {
    %c0_i32 = arith.constant 0 : i32
    %c0_i32_0 = arith.constant 0 : i32
    return %arg0, %c0_i32 : i32, i32
  }
}

</mosaic_0001>

<bundles_post_ra>
// kernel: tpu_custom_call.1
= control target key start
LH: loop header
LB: loop body
LE: loop exit
PB: predicated region body
PF: predicated region fallthrough
CT: control target
= control target key end

     0   :  { %10 = vsyncpa [#allocation3], 0  ;;  %s598_s0 = inlined_call_operand.hbm [shape: f32[8,128], index: 0, kind: input, shape index: {}]   ;;  %s599_s1 = inlined_call_operand.hbm [shape: bf16[128,128], index: 1, kind: input, shape index: {}]   ;;  %s600_s2 = inlined_call_operand.vmem [shape: f32[1,128], index: 2, kind: input, shape index: {}]   ;;  %s601_s3 = inlined_call_operand.hbm [shape: bf16[128,128], index: 3, kind: input, shape index: {}]   ;;  %s602_s4 = inlined_call_operand.vmem [shape: f32[1,128], index: 4, kind: input, shape index: {}]   ;;  %s603_s5 = inlined_call_operand.hbm [shape: f32[8,128], index: 5, kind: output, shape index: {}]  }
   0x1   :  { %11 = vsyncpa [#allocation6], 0 }
   0x2   :  { %12 = vsyncpa [#allocation4], 0  ;;  %s500_s18 = smov [#allocation5]   ;;  %s406_s22 = scalar_lea.hbm %s599_s1, 1024 }
   0x3   :  { %s28_s19 = sshll.u32 %s500_s18, 4  ;;  %p407_p0 = scmp.ne.s32.totalorder %s599_s1, %s406_s22  ;;  %s29_s19 = int_to_ptr.vmem [resolvable:$true] %s28_s19 }
   0x4   :  { %p410_p1 = scmp.lt.u32.totalorder %s406_s22, %s599_s1 }
   0x6   :  { %p412_p2 = pnand %p410_p1, %p407_p0 }
   0x8   :  { %415 = shalt.err (!%p412_p2)
}
   0x9   :  { %s416_s27 = scalar_lea.vmem %s29_s19, 1024  ;;  %p421_p4 = scmp.lt.s32.totalorder %s29_s19, %s29_s19 }
   0xa   :  { %p417_p3 = scmp.ne.s32.totalorder %s29_s19, %s416_s27  ;;  %p422_p5 = scmp.lt.s32.totalorder %s416_s27, %s416_s27 }
   0xc   :  { %p423_p6 = por %p422_p5, %p421_p4 }
   0xe   :  { %p424_p7 = pnand %p423_p6, %p417_p3 }
  0x10   :  { %427 = shalt.err (!%p424_p7)
}
  0x11   :  { %s501_s28 = smov 64   ;;  %s502_s29 = smov 4  }
  0x12   :  { %34 = dma.hbm_to_vmem [thread:$0]  %s599_s1, 1024, %s29_s19, [#allocation6], %s501_s28, %s501_s28, %s502_s29  }
  0x13   :  { %s503_s7 = smov [#allocation2]   ;;  %s504_s9 = smov [#allocation7]  }
  0x14   :  { %s19_s8 = sshll.u32 %s503_s7, 4  ;;  %s42_s10 = sshll.u32 %s504_s9, 4  ;;  %s20_s8 = int_to_ptr.vmem [resolvable:$true] %s19_s8  ;;  %s43_s10 = int_to_ptr.vmem [resolvable:$true] %s42_s10 }
  0x15   :  { %s428_s13 = scalar_lea.hbm %s598_s0, 128 }
  0x16   :  { %p429_p8 = scmp.ne.s32.totalorder %s598_s0, %s428_s13  ;;  %p432_p9 = scmp.lt.u32.totalorder %s428_s13, %s598_s0 }
  0x18   :  { %p434_p10 = pnand %p432_p9, %p429_p8 }
  0x1a   :  { %437 = shalt.err (!%p434_p10)
}
  0x1b   :  { %s438_s1 = scalar_lea.vmem %s20_s8, 128  ;;  %p443_p12 = scmp.lt.s32.totalorder %s20_s8, %s20_s8 }
  0x1c   :  { %p439_p11 = scmp.ne.s32.totalorder %s20_s8, %s438_s1  ;;  %p444_p13 = scmp.lt.s32.totalorder %s438_s1, %s438_s1 }
  0x1e   :  { %p445_p0 = por %p444_p13, %p443_p12 }
  0x20   :  { %p446_p1 = pnand %p445_p0, %p439_p11 }
  0x22   :  { %449 = shalt.err (!%p446_p1)
}
  0x23   :  { %22 = dma.hbm_to_vmem [thread:$0]  %s598_s0, 128, %s20_s8, [#allocation3]  }
  0x24   :  { %s450_s22 = scalar_lea.hbm %s601_s3, 1024 }
  0x25   :  { %p451_p2 = scmp.ne.s32.totalorder %s601_s3, %s450_s22  ;;  %p454_p3 = scmp.lt.u32.totalorder %s450_s22, %s601_s3 }
  0x27   :  { %p456_p4 = pnand %p454_p3, %p451_p2 }
  0x29   :  { %459 = shalt.err (!%p456_p4)
}
  0x2a   :  { %s460_s27 = scalar_lea.vmem %s43_s10, 1024  ;;  %p465_p6 = scmp.lt.s32.totalorder %s43_s10, %s43_s10 }
  0x2b   :  { %p461_p5 = scmp.ne.s32.totalorder %s43_s10, %s460_s27  ;;  %p466_p7 = scmp.lt.s32.totalorder %s460_s27, %s460_s27 }
  0x2d   :  { %p467_p8 = por %p466_p7, %p465_p6 }
  0x2f   :  { %p468_p9 = pnand %p467_p8, %p461_p5 }
  0x31   :  { %471 = shalt.err (!%p468_p9)
}
  0x32   :  { %48 = dma.hbm_to_vmem [thread:$0]  %s601_s3, 1024, %s43_s10, [#allocation6], %s501_s28, %s501_s28, %s502_s29  }
  0x33   :  { %494 = dma.done.wait [#allocation3], 128  }
  0x34   :  { %495 = vsyncadd [#allocation3], 4294967168 }
  0x35   :  { %496 = dma.done.wait [#allocation6], 2048  }
  0x36   :  { %497 = vsyncadd [#allocation6], 4294965248  ;;  %v505_v0 = vmov 0.0   ;;  %vm506_vm0 = vmmov 0   ;;  %v390_v1 = vld [vmem:[#allocation5] sm:$0xff]   ;;  %v391_v2 = vld [vmem:[#allocation5 + $0x8] sm:$0xff]  }
  0x37   :  { %342 = vmatprep.subr.bf16.mxu0 %v505_v0  ;;  %358 = vmatprep.mubr.msk.bf16.mxu0 %vm506_vm0, %v505_v0  ;;  %v392_v3 = vld [vmem:[#allocation5 + $0x10] sm:$0xff]   ;;  %v398_v4 = vld [vmem:[#allocation7] sm:$0xff]   ;;  %v393_v5 = vld [vmem:[#allocation5 + $0x18] sm:$0xff]   ;;  %s507_s7 = smov [#allocation8]  }
  0x38   :  { %362 = vmatprep.subr.bf16.mxu1 %v505_v0  ;;  %378 = vmatprep.mubr.msk.bf16.mxu1 %vm506_vm0, %v505_v0  ;;  %v399_v6 = vld [vmem:[#allocation7 + $0x8] sm:$0xff]   ;;  %v394_v7 = vld [vmem:[#allocation5 + $0x20] sm:$0xff]   ;;  %v400_v8 = vld [vmem:[#allocation7 + $0x10] sm:$0xff]   ;;  %s296_s8 = sshll.u32 %s507_s7, 4  ;;  %s297_s8 = int_to_ptr.vmem [resolvable:$true] %s296_s8 }
  0x39   :  { %343 = vmatpush3.bf16.msra.mxu0 %v390_v1  ;;  %363 = vmatpush3.bf16.msra.mxu1 %v398_v4  ;;  %v395_v9 = vld [vmem:[#allocation5 + $0x28] sm:$0xff]   ;;  %v401_v10 = vld [vmem:[#allocation7 + $0x18] sm:$0xff]   ;;  %v396_v11 = vld [vmem:[#allocation5 + $0x30] sm:$0xff]   ;;  %p477_p11 = scmp.lt.s32.totalorder %s297_s8, %s297_s8 }
  0x3a   :  { %344 = vmatprep.subr.bf16.mxu0 %v505_v0  ;;  %364 = vmatprep.subr.bf16.mxu1 %v505_v0  ;;  %v402_v12 = vld [vmem:[#allocation7 + $0x20] sm:$0xff]   ;;  %v397_v13 = vld [vmem:[#allocation5 + $0x38] sm:$0xff]   ;;  %v403_v15 = vld [vmem:[#allocation7 + $0x28] sm:$0xff]  }
  0x3b   :  { %v61_v14 = vld [vmem:[#allocation2] sm:$0xff]  ;;  %v404_v17 = vld [vmem:[#allocation7 + $0x30] sm:$0xff]  }
  0x3c   :  { %v62_v16 = vpack.c.bf16 %v61_v14, %v61_v14  ;;  %v405_v18 = vld [vmem:[#allocation7 + $0x38] sm:$0xff]  }
  0x3d   :  { %345 = vmatpush3.bf16.msra.mxu0 %v391_v2  ;;  %365 = vmatpush3.bf16.msra.mxu1 %v399_v6  ;;  %v306_v19 = vld [vmem:[%s600_s2] ss:$0 sm:$0xff]  ;;  %s472_s2 = scalar_lea.vmem %s297_s8, 128 }
  0x3e   :  { %346 = vmatprep.subr.bf16.mxu0 %v505_v0  ;;  %366 = vmatprep.subr.bf16.mxu1 %v505_v0  ;;  %v315_v27 = vld [vmem:[%s602_s4] ss:$0 sm:$0xff]  ;;  %p473_p10 = scmp.ne.s32.totalorder %s297_s8, %s472_s2  ;;  %p478_p12 = scmp.lt.s32.totalorder %s472_s2, %s472_s2 }
  0x40   :  { %p479_p13 = por %p478_p12, %p477_p11 }
  0x41   :  { %347 = vmatpush3.bf16.msra.mxu0 %v392_v3  ;;  %367 = vmatpush3.bf16.msra.mxu1 %v400_v8 }
  0x42   :  { %348 = vmatprep.subr.bf16.mxu0 %v505_v0  ;;  %368 = vmatprep.subr.bf16.mxu1 %v505_v0  ;;  %p480_p0 = pnand %p479_p13, %p473_p10 }
  0x45   :  { %349 = vmatpush3.bf16.msra.mxu0 %v393_v5  ;;  %369 = vmatpush3.bf16.msra.mxu1 %v401_v10 }
  0x46   :  { %350 = vmatprep.subr.bf16.mxu0 %v505_v0  ;;  %370 = vmatprep.subr.bf16.mxu1 %v505_v0 }
  0x49   :  { %351 = vmatpush3.bf16.msra.mxu0 %v394_v7  ;;  %371 = vmatpush3.bf16.msra.mxu1 %v402_v12 }
  0x4a   :  { %352 = vmatprep.subr.bf16.mxu0 %v505_v0  ;;  %372 = vmatprep.subr.bf16.mxu1 %v505_v0 }
  0x4d   :  { %353 = vmatpush3.bf16.msra.mxu0 %v395_v9  ;;  %373 = vmatpush3.bf16.msra.mxu1 %v403_v15 }
  0x4e   :  { %354 = vmatprep.subr.bf16.mxu0 %v505_v0  ;;  %374 = vmatprep.subr.bf16.mxu1 %v505_v0 }
  0x51   :  { %355 = vmatpush3.bf16.msra.mxu0 %v396_v11  ;;  %375 = vmatpush3.bf16.msra.mxu1 %v404_v17 }
  0x52   :  { %356 = vmatprep.subr.bf16.mxu0 %v505_v0  ;;  %376 = vmatprep.subr.bf16.mxu1 %v505_v0 }
  0x55   :  { %357 = vmatpush3.bf16.msra.mxu0 %v397_v13  ;;  %377 = vmatpush3.bf16.msra.mxu1 %v405_v18 }
  0x58   :  { %359 = vmatmul.mubr.bf16.vlgmr.msra.gmra.mrb[0].mxu0 %v62_v16 }
 0x12b   :  { %v168_v20 = vpop.f32.mrb[0].mxu0 }
 0x12c   :  { %v169_v21 = vadd.f32 %v306_v19, %v168_v20  ;;  %v360_v22 = vpop.f32.mrb[1].mxu0 }
 0x12d   :  { %v171_v23 = vpop.f32.mrb[2].mxu0 }
 0x12e   :  { %v174_v24 = vmax.f32 %v169_v21, 0.0  ;;  %v361_v25 = vpop.f32.mrb[3].mxu0 }
 0x130   :  { %v175_v26 = vpack.c.bf16 %v174_v24, %v174_v24 }
 0x132   :  { %379 = vmatmul.mubr.bf16.vlgmr.msra.gmra.mrb[0].mxu1 %v175_v26 }
 0x205   :  { %v281_v28 = vpop.f32.mrb[0].mxu1 }
 0x206   :  { %v282_v29 = vadd.f32 %v315_v27, %v281_v28  ;;  %v380_v30 = vpop.f32.mrb[1].mxu1 }
 0x207   :  { %v284_v31 = vpop.f32.mrb[2].mxu1 }
 0x208   :  { %v287_v32 = vmax.f32 %v282_v29, 0.0  ;;  %v381_v33 = vpop.f32.mrb[3].mxu1 }
 0x20a   :  { %v288_v34 = vadd.f32 %v287_v32, %v61_v14 }
 0x20c   :  { %289 = vst [vmem:[#allocation8] sm:$0xff] %v288_v34 }
 0x20d   :  { %483 = shalt.err (!%p480_p0)
}
 0x20e   :  { %s484_s10 = scalar_lea.hbm %s603_s5, 128 }
 0x20f   :  { %p485_p1 = scmp.ne.s32.totalorder %s603_s5, %s484_s10  ;;  %p488_p2 = scmp.lt.u32.totalorder %s484_s10, %s603_s5 }
 0x211   :  { %p490_p3 = pnand %p488_p2, %p485_p1 }
 0x213   :  { %493 = shalt.err (!%p490_p3)
}
 0x214   :  { %299 = dma.vmem_to_hbm [thread:$0]  %s297_s8, 128, %s603_s5, [#allocation4]  }
 0x215   :  { %498 = dma.done.wait [#allocation4], 128  }
 0x216   :  { %499 = vsyncadd [#allocation4], 4294967168 }
 0x217   :  { %303 = vsyncpa [#allocation3], 1 }
 0x218   :  { %304 = vsyncpa [#allocation6], 1 }
 0x219   :  { %305 = vsyncpa [#allocation4], 1 }

// kernel: tpu_custom_call.1
= control target key start
LH: loop header
LB: loop body
LE: loop exit
PB: predicated region body
PF: predicated region fallthrough
CT: control target
= control target key end

     0   :  { %10 = vsyncpa [#allocation3], 0  ;;  %s598_s0 = inlined_call_operand.hbm [shape: f32[8,128], index: 0, kind: input, shape index: {}]   ;;  %s599_s1 = inlined_call_operand.hbm [shape: bf16[128,128], index: 1, kind: input, shape index: {}]   ;;  %s600_s2 = inlined_call_operand.vmem [shape: f32[1,128], index: 2, kind: input, shape index: {}]   ;;  %s601_s3 = inlined_call_operand.hbm [shape: bf16[128,128], index: 3, kind: input, shape index: {}]   ;;  %s602_s4 = inlined_call_operand.vmem [shape: f32[1,128], index: 4, kind: input, shape index: {}]   ;;  %s603_s5 = inlined_call_operand.hbm [shape: f32[8,128], index: 5, kind: output, shape index: {}]  }
   0x1   :  { %11 = vsyncpa [#allocation6], 0 }
   0x2   :  { %12 = vsyncpa [#allocation4], 0  ;;  %s500_s18 = smov [#allocation5]   ;;  %s406_s22 = scalar_lea.hbm %s599_s1, 1024 }
   0x3   :  { %s28_s19 = sshll.u32 %s500_s18, 4  ;;  %p407_p0 = scmp.ne.s32.totalorder %s599_s1, %s406_s22  ;;  %s29_s19 = int_to_ptr.vmem [resolvable:$true] %s28_s19 }
   0x4   :  { %p410_p1 = scmp.lt.u32.totalorder %s406_s22, %s599_s1 }
   0x6   :  { %p412_p2 = pnand %p410_p1, %p407_p0 }
   0x8   :  { %415 = shalt.err (!%p412_p2)
}
   0x9   :  { %s416_s27 = scalar_lea.vmem %s29_s19, 1024  ;;  %p421_p4 = scmp.lt.s32.totalorder %s29_s19, %s29_s19 }
   0xa   :  { %p417_p3 = scmp.ne.s32.totalorder %s29_s19, %s416_s27  ;;  %p422_p5 = scmp.lt.s32.totalorder %s416_s27, %s416_s27 }
   0xc   :  { %p423_p6 = por %p422_p5, %p421_p4 }
   0xe   :  { %p424_p7 = pnand %p423_p6, %p417_p3 }
  0x10   :  { %427 = shalt.err (!%p424_p7)
}
  0x11   :  { %s501_s28 = smov 64   ;;  %s502_s29 = smov 4  }
  0x12   :  { %34 = dma.hbm_to_vmem [thread:$0]  %s599_s1, 1024, %s29_s19, [#allocation6], %s501_s28, %s501_s28, %s502_s29  }
  0x13   :  { %s503_s7 = smov [#allocation2]   ;;  %s504_s9 = smov [#allocation7]  }
  0x14   :  { %s19_s8 = sshll.u32 %s503_s7, 4  ;;  %s42_s10 = sshll.u32 %s504_s9, 4  ;;  %s20_s8 = int_to_ptr.vmem [resolvable:$true] %s19_s8  ;;  %s43_s10 = int_to_ptr.vmem [resolvable:$true] %s42_s10 }
  0x15   :  { %s428_s13 = scalar_lea.hbm %s598_s0, 128 }
  0x16   :  { %p429_p8 = scmp.ne.s32.totalorder %s598_s0, %s428_s13  ;;  %p432_p9 = scmp.lt.u32.totalorder %s428_s13, %s598_s0 }
  0x18   :  { %p434_p10 = pnand %p432_p9, %p429_p8 }
  0x1a   :  { %437 = shalt.err (!%p434_p10)
}
  0x1b   :  { %s438_s1 = scalar_lea.vmem %s20_s8, 128  ;;  %p443_p12 = scmp.lt.s32.totalorder %s20_s8, %s20_s8 }
  0x1c   :  { %p439_p11 = scmp.ne.s32.totalorder %s20_s8, %s438_s1  ;;  %p444_p13 = scmp.lt.s32.totalorder %s438_s1, %s438_s1 }
  0x1e   :  { %p445_p0 = por %p444_p13, %p443_p12 }
  0x20   :  { %p446_p1 = pnand %p445_p0, %p439_p11 }
  0x22   :  { %449 = shalt.err (!%p446_p1)
}
  0x23   :  { %22 = dma.hbm_to_vmem [thread:$0]  %s598_s0, 128, %s20_s8, [#allocation3]  }
  0x24   :  { %s450_s22 = scalar_lea.hbm %s601_s3, 1024 }
  0x25   :  { %p451_p2 = scmp.ne.s32.totalorder %s601_s3, %s450_s22  ;;  %p454_p3 = scmp.lt.u32.totalorder %s450_s22, %s601_s3 }
  0x27   :  { %p456_p4 = pnand %p454_p3, %p451_p2 }
  0x29   :  { %459 = shalt.err (!%p456_p4)
}
  0x2a   :  { %s460_s27 = scalar_lea.vmem %s43_s10, 1024  ;;  %p465_p6 = scmp.lt.s32.totalorder %s43_s10, %s43_s10 }
  0x2b   :  { %p461_p5 = scmp.ne.s32.totalorder %s43_s10, %s460_s27  ;;  %p466_p7 = scmp.lt.s32.totalorder %s460_s27, %s460_s27 }
  0x2d   :  { %p467_p8 = por %p466_p7, %p465_p6 }
  0x2f   :  { %p468_p9 = pnand %p467_p8, %p461_p5 }
  0x31   :  { %471 = shalt.err (!%p468_p9)
}
  0x32   :  { %48 = dma.hbm_to_vmem [thread:$0]  %s601_s3, 1024, %s43_s10, [#allocation6], %s501_s28, %s501_s28, %s502_s29  }
  0x33   :  { %494 = dma.done.wait [#allocation3], 128  }
  0x34   :  { %495 = vsyncadd [#allocation3], 4294967168 }
  0x35   :  { %496 = dma.done.wait [#allocation6], 2048  }
  0x36   :  { %497 = vsyncadd [#allocation6], 4294965248  ;;  %v505_v0 = vmov 0.0   ;;  %vm506_vm0 = vmmov 0   ;;  %v390_v1 = vld [vmem:[#allocation5] sm:$0xff]   ;;  %v391_v2 = vld [vmem:[#allocation5 + $0x8] sm:$0xff]  }
  0x37   :  { %342 = vmatprep.subr.bf16.mxu0 %v505_v0  ;;  %358 = vmatprep.mubr.msk.bf16.mxu0 %vm506_vm0, %v505_v0  ;;  %v392_v3 = vld [vmem:[#allocation5 + $0x10] sm:$0xff]   ;;  %v398_v4 = vld [vmem:[#allocation7] sm:$0xff]   ;;  %v393_v5 = vld [vmem:[#allocation5 + $0x18] sm:$0xff]   ;;  %s507_s7 = smov [#allocation8]  }
  0x38   :  { %362 = vmatprep.subr.bf16.mxu1 %v505_v0  ;;  %378 = vmatprep.mubr.msk.bf16.mxu1 %vm506_vm0, %v505_v0  ;;  %v399_v6 = vld [vmem:[#allocation7 + $0x8] sm:$0xff]   ;;  %v394_v7 = vld [vmem:[#allocation5 + $0x20] sm:$0xff]   ;;  %v400_v8 = vld [vmem:[#allocation7 + $0x10] sm:$0xff]   ;;  %s296_s8 = sshll.u32 %s507_s7, 4  ;;  %s297_s8 = int_to_ptr.vmem [resolvable:$true] %s296_s8 }
  0x39   :  { %343 = vmatpush3.bf16.msra.mxu0 %v390_v1  ;;  %363 = vmatpush3.bf16.msra.mxu1 %v398_v4  ;;  %v395_v9 = vld [vmem:[#allocation5 + $0x28] sm:$0xff]   ;;  %v401_v10 = vld [vmem:[#allocation7 + $0x18] sm:$0xff]   ;;  %v396_v11 = vld [vmem:[#allocation5 + $0x30] sm:$0xff]   ;;  %p477_p11 = scmp.lt.s32.totalorder %s297_s8, %s297_s8 }
  0x3a   :  { %344 = vmatprep.subr.bf16.mxu0 %v505_v0  ;;  %364 = vmatprep.subr.bf16.mxu1 %v505_v0  ;;  %v402_v12 = vld [vmem:[#allocation7 + $0x20] sm:$0xff]   ;;  %v397_v13 = vld [vmem:[#allocation5 + $0x38] sm:$0xff]   ;;  %v403_v15 = vld [vmem:[#allocation7 + $0x28] sm:$0xff]  }
  0x3b   :  { %v61_v14 = vld [vmem:[#allocation2] sm:$0xff]  ;;  %v404_v17 = vld [vmem:[#allocation7 + $0x30] sm:$0xff]  }
  0x3c   :  { %v62_v16 = vpack.c.bf16 %v61_v14, %v61_v14  ;;  %v405_v18 = vld [vmem:[#allocation7 + $0x38] sm:$0xff]  }
  0x3d   :  { %345 = vmatpush3.bf16.msra.mxu0 %v391_v2  ;;  %365 = vmatpush3.bf16.msra.mxu1 %v399_v6  ;;  %v306_v19 = vld [vmem:[%s600_s2] ss:$0 sm:$0xff]  ;;  %s472_s2 = scalar_lea.vmem %s297_s8, 128 }
  0x3e   :  { %346 = vmatprep.subr.bf16.mxu0 %v505_v0  ;;  %366 = vmatprep.subr.bf16.mxu1 %v505_v0  ;;  %v315_v27 = vld [vmem:[%s602_s4] ss:$0 sm:$0xff]  ;;  %p473_p10 = scmp.ne.s32.totalorder %s297_s8, %s472_s2  ;;  %p478_p12 = scmp.lt.s32.totalorder %s472_s2, %s472_s2 }
  0x40   :  { %p479_p13 = por %p478_p12, %p477_p11 }
  0x41   :  { %347 = vmatpush3.bf16.msra.mxu0 %v392_v3  ;;  %367 = vmatpush3.bf16.msra.mxu1 %v400_v8 }
  0x42   :  { %348 = vmatprep.subr.bf16.mxu0 %v505_v0  ;;  %368 = vmatprep.subr.bf16.mxu1 %v505_v0  ;;  %p480_p0 = pnand %p479_p13, %p473_p10 }
  0x45   :  { %349 = vmatpush3.bf16.msra.mxu0 %v393_v5  ;;  %369 = vmatpush3.bf16.msra.mxu1 %v401_v10 }
  0x46   :  { %350 = vmatprep.subr.bf16.mxu0 %v505_v0  ;;  %370 = vmatprep.subr.bf16.mxu1 %v505_v0 }
  0x49   :  { %351 = vmatpush3.bf16.msra.mxu0 %v394_v7  ;;  %371 = vmatpush3.bf16.msra.mxu1 %v402_v12 }
  0x4a   :  { %352 = vmatprep.subr.bf16.mxu0 %v505_v0  ;;  %372 = vmatprep.subr.bf16.mxu1 %v505_v0 }
  0x4d   :  { %353 = vmatpush3.bf16.msra.mxu0 %v395_v9  ;;  %373 = vmatpush3.bf16.msra.mxu1 %v403_v15 }
  0x4e   :  { %354 = vmatprep.subr.bf16.mxu0 %v505_v0  ;;  %374 = vmatprep.subr.bf16.mxu1 %v505_v0 }
  0x51   :  { %355 = vmatpush3.bf16.msra.mxu0 %v396_v11  ;;  %375 = vmatpush3.bf16.msra.mxu1 %v404_v17 }
  0x52   :  { %356 = vmatprep.subr.bf16.mxu0 %v505_v0  ;;  %376 = vmatprep.subr.bf16.mxu1 %v505_v0 }
  0x55   :  { %357 = vmatpush3.bf16.msra.mxu0 %v397_v13  ;;  %377 = vmatpush3.bf16.msra.mxu1 %v405_v18 }
  0x58   :  { %359 = vmatmul.mubr.bf16.vlgmr.msra.gmra.mrb[0].mxu0 %v62_v16 }
 0x12b   :  { %v168_v20 = vpop.f32.mrb[0].mxu0 }
 0x12c   :  { %v169_v21 = vadd.f32 %v306_v19, %v168_v20  ;;  %v360_v22 = vpop.f32.mrb[1].mxu0 }
 0x12d   :  { %v171_v23 = vpop.f32.mrb[2].mxu0 }
 0x12e   :  { %v174_v24 = vmax.f32 %v169_v21, 0.0  ;;  %v361_v25 = vpop.f32.mrb[3].mxu0 }
 0x130   :  { %v175_v26 = vpack.c.bf16 %v174_v24, %v174_v24 }
 0x132   :  { %379 = vmatmul.mubr.bf16.vlgmr.msra.gmra.mrb[0].mxu1 %v175_v26 }
 0x205   :  { %v281_v28 = vpop.f32.mrb[0].mxu1 }
 0x206   :  { %v282_v29 = vadd.f32 %v315_v27, %v281_v28  ;;  %v380_v30 = vpop.f32.mrb[1].mxu1 }
 0x207   :  { %v284_v31 = vpop.f32.mrb[2].mxu1 }
 0x208   :  { %v287_v32 = vmax.f32 %v282_v29, 0.0  ;;  %v381_v33 = vpop.f32.mrb[3].mxu1 }
 0x20a   :  { %v288_v34 = vadd.f32 %v287_v32, %v61_v14 }
 0x20c   :  { %289 = vst [vmem:[#allocation8] sm:$0xff] %v288_v34 }
 0x20d   :  { %483 = shalt.err (!%p480_p0)
}
 0x20e   :  { %s484_s10 = scalar_lea.hbm %s603_s5, 128 }
 0x20f   :  { %p485_p1 = scmp.ne.s32.totalorder %s603_s5, %s484_s10  ;;  %p488_p2 = scmp.lt.u32.totalorder %s484_s10, %s603_s5 }
 0x211   :  { %p490_p3 = pnand %p488_p2, %p485_p1 }
 0x213   :  { %493 = shalt.err (!%p490_p3)
}
 0x214   :  { %299 = dma.vmem_to_hbm [thread:$0]  %s297_s8, 128, %s603_s5, [#allocation4]  }
 0x215   :  { %498 = dma.done.wait [#allocation4], 128  }
 0x216   :  { %499 = vsyncadd [#allocation4], 4294967168 }
 0x217   :  { %303 = vsyncpa [#allocation3], 1 }
 0x218   :  { %304 = vsyncpa [#allocation6], 1 }
 0x219   :  { %305 = vsyncpa [#allocation4], 1 }

</bundles_post_ra>
